<compile_context>
chip_gen: v7x
topology: tpu7x:2x2x1
jax: 0.10.0
libtpu: 0.0.40
codegen_flags: <defaults>
</compile_context>

<pallas_src>
import math

import jax
import jax.numpy as jnp
from jax.experimental import pallas as pl
from jax.experimental.pallas import tpu as pltpu


def make_mha_kernel(n_head, d_k, d_v, eps=1e-5):
    inv_temp = 1.0 / math.sqrt(float(d_k))

    def kernel(q_ref, k_ref, v_ref, wq_ref, wk_ref, wv_ref, wfc_ref,
               gamma_ref, beta_ref, out_ref, attn_ref):
        bt, len_q, d_model = q_ref.shape
        len_k = k_ref.shape[1]

        # Flatten (batch_tile, len, d_model) -> (batch_tile*len, d_model) so the
        # projection matmuls get a large M dimension.
        q2 = q_ref[...].reshape(bt * len_q, d_model)          # f32, kept for residual
        k2 = k_ref[...].reshape(bt * len_k, d_model)
        v2 = v_ref[...].reshape(bt * len_k, d_model)

        # QKV projections (Linear, bias=False): bf16 MXU inputs, f32 accumulation.
        qp = jnp.dot(q2.astype(jnp.bfloat16), wq_ref[...],
                     preferred_element_type=jnp.float32)      # (bt*len_q, n_head*d_k)
        kp = jnp.dot(k2.astype(jnp.bfloat16), wk_ref[...],
                     preferred_element_type=jnp.float32)      # (bt*len_k, n_head*d_k)
        vp = jnp.dot(v2.astype(jnp.bfloat16), wv_ref[...],
                     preferred_element_type=jnp.float32)      # (bt*len_k, n_head*d_v)

        probs_list = []
        ctx_list = []
        for h in range(n_head):
            qh = qp[:, h * d_k:(h + 1) * d_k].reshape(bt, len_q, d_k).astype(jnp.bfloat16)
            kh = kp[:, h * d_k:(h + 1) * d_k].reshape(bt, len_k, d_k).astype(jnp.bfloat16)
            vh = vp[:, h * d_v:(h + 1) * d_v].reshape(bt, len_k, d_v).astype(jnp.bfloat16)

            # batched (over the batch tile) Q K^T, softmax in f32
            s = jnp.einsum('bqd,bkd->bqk', qh, kh,
                           preferred_element_type=jnp.float32) * inv_temp
            s = s - jnp.max(s, axis=-1, keepdims=True)
            e = jnp.exp(s)
            denom = jnp.sum(e, axis=-1, keepdims=True)
            p = e * pl.reciprocal(denom, approx=True)          # EUP, not VALU divide
            probs_list.append(p)

            ctx_list.append(jnp.einsum('bqk,bkd->bqd', p.astype(jnp.bfloat16), vh,
                                       preferred_element_type=jnp.float32))

        # One store of the whole head stack of attention probabilities.
        attn_ref[...] = jnp.stack(probs_list, axis=1).astype(attn_ref.dtype)

        # Head concat along lanes -> single fused fc matmul with K = n_head*d_v.
        ctx = jnp.concatenate(ctx_list, axis=-1).reshape(bt * len_q, n_head * d_v)
        out = jnp.dot(ctx.astype(jnp.bfloat16), wfc_ref[...],
                      preferred_element_type=jnp.float32)      # (bt*len_q, d_model)

        # residual + LayerNorm(d_model) in f32
        y = out + q2
        mean = jnp.mean(y, axis=-1, keepdims=True)
        var = jnp.mean((y - mean) ** 2, axis=-1, keepdims=True)
        normed = (y - mean) * jax.lax.rsqrt(var + eps)
        res = normed * gamma_ref[...] + beta_ref[...]
        out_ref[...] = res.reshape(bt, len_q, d_model).astype(out_ref.dtype)

    return kernel


def _pick_b_tile(sz_b, len_q):
    """Batch elements folded per grid step.

    Aim for ~128 matmul rows per block, but keep >=2 grid steps when the batch
    allows (so both v7x TensorCores get work), and require the tile to divide
    the batch so no ragged blocks are generated.
    """
    ideal = min(sz_b, max(1, -(-128 // max(1, len_q))))   # ceil(128/len_q), capped
    if ideal >= sz_b and sz_b >= 2:
        ideal = max(1, sz_b // 2)                         # leave >=2 parallel steps
    for bt in range(ideal, 0, -1):
        if sz_b % bt == 0:
            return bt
    return 1


def multi_head_attention(q, k, v, params, *, n_head, d_k, d_v, b_tile=None):
    """q, k, v: (sz_b, len, d_model) float32. Returns (output, attn) matching torch."""
    sz_b, len_q, d_model = q.shape
    _, len_k, _ = k.shape
    assert n_head > 1, "this kernel implements the n_head > 1 (with fc) path"

    if b_tile is None:
        b_tile = _pick_b_tile(sz_b, len_q)
    assert sz_b % b_tile == 0
    grid_b = sz_b // b_tile

    # Pre-transpose Linear weights so the kernel does x @ W; cast once to bf16
    # for the MXU (accumulation stays f32 inside the kernel).
    wqT = params["w_qs"].T.astype(jnp.bfloat16)     # (d_model, n_head*d_k)
    wkT = params["w_ks"].T.astype(jnp.bfloat16)     # (d_model, n_head*d_k)
    wvT = params["w_vs"].T.astype(jnp.bfloat16)     # (d_model, n_head*d_v)
    wfcT = params["fc"].T.astype(jnp.bfloat16)      # (n_head*d_v, d_model)
    gamma = params["ln_gamma"].reshape(1, d_model).astype(jnp.float32)
    beta = params["ln_beta"].reshape(1, d_model).astype(jnp.float32)

    kernel = make_mha_kernel(n_head, d_k, d_v)

    out, attn = pl.pallas_call(
        kernel,
        out_shape=(
            jax.ShapeDtypeStruct((sz_b, len_q, d_model), q.dtype),
            jax.ShapeDtypeStruct((sz_b, n_head, len_q, len_k), jnp.float32),
        ),
        grid=(grid_b,),
        in_specs=[
            pl.BlockSpec((b_tile, len_q, d_model), lambda b: (b, 0, 0)),
            pl.BlockSpec((b_tile, len_k, d_model), lambda b: (b, 0, 0)),
            pl.BlockSpec((b_tile, len_k, d_model), lambda b: (b, 0, 0)),
            pl.BlockSpec((d_model, n_head * d_k), lambda b: (0, 0)),
            pl.BlockSpec((d_model, n_head * d_k), lambda b: (0, 0)),
            pl.BlockSpec((d_model, n_head * d_v), lambda b: (0, 0)),
            pl.BlockSpec((n_head * d_v, d_model), lambda b: (0, 0)),
            pl.BlockSpec((1, d_model), lambda b: (0, 0)),
            pl.BlockSpec((1, d_model), lambda b: (0, 0)),
        ],
        out_specs=(
            pl.BlockSpec((b_tile, len_q, d_model), lambda b: (b, 0, 0)),
            pl.BlockSpec((b_tile, n_head, len_q, len_k), lambda b: (b, 0, 0, 0)),
        ),
        compiler_params=pltpu.CompilerParams(dimension_semantics=("parallel",)),
    )(q, k, v, wqT, wkT, wvT, wfcT, gamma, beta)

    # torch returns attn with leading dim n_head*sz_b (head-major).
    attn = attn.transpose(1, 0, 2, 3).reshape(n_head * sz_b, len_q, len_k)
    return out, attn


def reference_mha(q, k, v, params, *, n_head, d_k, d_v, eps=1e-5):
    """Pure-JAX f32 reference mirroring the PyTorch forward (eval mode)."""
    sz_b, len_q, d_model = q.shape
    _, len_k, _ = k.shape
    qp = q @ params["w_qs"].T
    kp = k @ params["w_ks"].T
    vp = v @ params["w_vs"].T
    qh = qp.reshape(sz_b, len_q, n_head, d_k).transpose(2, 0, 1, 3).reshape(-1, len_q, d_k)
    kh = kp.reshape(sz_b, len_k, n_head, d_k).transpose(2, 0, 1, 3).reshape(-1, len_k, d_k)
    vh = vp.reshape(sz_b, len_k, n_head, d_v).transpose(2, 0, 1, 3).reshape(-1, len_k, d_v)
    attn = jnp.einsum("bqd,bkd->bqk", qh, kh) / math.sqrt(float(d_k))
    attn = jax.nn.softmax(attn, axis=-1)
    out = jnp.einsum("bqk,bkd->bqd", attn, vh)
    out = out.reshape(n_head, sz_b, len_q, d_v).transpose(1, 2, 0, 3).reshape(sz_b, len_q, -1)
    out = out @ params["fc"].T
    y = out + q
    mean = y.mean(-1, keepdims=True)
    var = ((y - mean) ** 2).mean(-1, keepdims=True)
    out = (y - mean) / jnp.sqrt(var + eps) * params["ln_gamma"] + params["ln_beta"]
    return out, attn


def init_params(key, d_model, n_head, d_k, d_v):
    k1, k2, k3, k4 = jax.random.split(key, 4)
    std_qk = math.sqrt(2.0 / (d_model + d_k))
    std_v = math.sqrt(2.0 / (d_model + d_v))
    std_fc = math.sqrt(2.0 / (n_head * d_v + d_model))   # xavier_normal
    return {
        "w_qs": std_qk * jax.random.normal(k1, (n_head * d_k, d_model), jnp.float32),
        "w_ks": std_qk * jax.random.normal(k2, (n_head * d_k, d_model), jnp.float32),
        "w_vs": std_v * jax.random.normal(k3, (n_head * d_v, d_model), jnp.float32),
        "fc": std_fc * jax.random.normal(k4, (d_model, n_head * d_v), jnp.float32),
        "ln_gamma": jnp.ones((d_model,), jnp.float32),
        "ln_beta": jnp.zeros((d_model,), jnp.float32),
    }


if __name__ == "__main__":
    sz_b, seq, d_model = 2, 8, 32
    n_head, d_k, d_v = 2, 16, 16

    key = jax.random.PRNGKey(0)
    kq, kk, kv, kp = jax.random.split(key, 4)
    q = jax.random.normal(kq, (sz_b, seq, d_model), jnp.float32)
    k = jax.random.normal(kk, (sz_b, seq, d_model), jnp.float32)
    v = jax.random.normal(kv, (sz_b, seq, d_model), jnp.float32)
    params = init_params(kp, d_model, n_head, d_k, d_v)

    out, attn = multi_head_attention(q, k, v, params, n_head=n_head, d_k=d_k, d_v=d_v)
    out = jax.block_until_ready(out)
    attn = jax.block_until_ready(attn)

    out_ref, attn_ref = reference_mha(q, k, v, params, n_head=n_head, d_k=d_k, d_v=d_v)
    assert out.shape == (sz_b, seq, d_model)
    assert attn.shape == (n_head * sz_b, seq, seq)
    # Tolerances account for bf16 MXU inputs (f32 accumulation) + approx reciprocal.
    assert jnp.allclose(out, out_ref, atol=3e-2, rtol=3e-2)
    assert jnp.allclose(attn, attn_ref, atol=3e-2, rtol=3e-2)

    print("KERNEL_OK")
</pallas_src>

<mosaic_0001>
module attributes {stable_mosaic.version = 11 : i64} {
  func.func @kernel(%arg0: i32, %arg1: memref<1x8x32xf32, #tpu.memory_space<vmem>>, %arg2: memref<1x8x32xf32, #tpu.memory_space<vmem>>, %arg3: memref<1x8x32xf32, #tpu.memory_space<vmem>>, %arg4: memref<32x32xbf16, #tpu.memory_space<vmem>>, %arg5: memref<32x32xbf16, #tpu.memory_space<vmem>>, %arg6: memref<32x32xbf16, #tpu.memory_space<vmem>>, %arg7: memref<32x32xbf16, #tpu.memory_space<vmem>>, %arg8: memref<1x32xf32, #tpu.memory_space<vmem>>, %arg9: memref<1x32xf32, #tpu.memory_space<vmem>>, %arg10: memref<1x8x32xf32, #tpu.memory_space<vmem>>, %arg11: memref<1x2x8x8xf32, #tpu.memory_space<vmem>>) attributes {dimension_semantics = [#tpu.dimension_semantics<parallel>], iteration_bounds = array<i64: 2>, scalar_prefetch = 0 : i64, scratch_operands = 0 : i64, tpu.core_type = #tpu.core_type<tc>, window_params = [{transform_indices = @transform_0, window_bounds = array<i64: 1, 8, 32>}, {transform_indices = @transform_1, window_bounds = array<i64: 1, 8, 32>}, {transform_indices = @transform_2, window_bounds = array<i64: 1, 8, 32>}, {pipeline_mode = #tpu.pipeline_mode<synchronous>, transform_indices = @transform_3, window_bounds = array<i64: 32, 32>}, {pipeline_mode = #tpu.pipeline_mode<synchronous>, transform_indices = @transform_4, window_bounds = array<i64: 32, 32>}, {pipeline_mode = #tpu.pipeline_mode<synchronous>, transform_indices = @transform_5, window_bounds = array<i64: 32, 32>}, {pipeline_mode = #tpu.pipeline_mode<synchronous>, transform_indices = @transform_6, window_bounds = array<i64: 32, 32>}, {pipeline_mode = #tpu.pipeline_mode<synchronous>, transform_indices = @transform_7, window_bounds = array<i64: 1, 32>}, {pipeline_mode = #tpu.pipeline_mode<synchronous>, transform_indices = @transform_8, window_bounds = array<i64: 1, 32>}, {transform_indices = @transform_9, window_bounds = array<i64: 1, 8, 32>}, {transform_indices = @transform_10, window_bounds = array<i64: 1, 2, 8, 8>}]} {
    %c0 = arith.constant 0 : index
    %c0_0 = arith.constant 0 : index
    %c0_1 = arith.constant 0 : index
    %0 = vector.load %arg1[%c0, %c0_0, %c0_1] : memref<1x8x32xf32, #tpu.memory_space<vmem>>, vector<1x8x32xf32>
    %1 = vector.shape_cast %0 : vector<1x8x32xf32> to vector<8x32xf32>
    %c0_2 = arith.constant 0 : index
    %c0_3 = arith.constant 0 : index
    %c0_4 = arith.constant 0 : index
    %2 = vector.load %arg2[%c0_2, %c0_3, %c0_4] : memref<1x8x32xf32, #tpu.memory_space<vmem>>, vector<1x8x32xf32>
    %3 = vector.shape_cast %2 : vector<1x8x32xf32> to vector<8x32xf32>
    %c0_5 = arith.constant 0 : index
    %c0_6 = arith.constant 0 : index
    %c0_7 = arith.constant 0 : index
    %4 = vector.load %arg3[%c0_5, %c0_6, %c0_7] : memref<1x8x32xf32, #tpu.memory_space<vmem>>, vector<1x8x32xf32>
    %5 = vector.shape_cast %4 : vector<1x8x32xf32> to vector<8x32xf32>
    %6 = arith.truncf %1 : vector<8x32xf32> to vector<8x32xbf16>
    %c0_8 = arith.constant 0 : index
    %c0_9 = arith.constant 0 : index
    %7 = vector.load %arg4[%c0_8, %c0_9] : memref<32x32xbf16, #tpu.memory_space<vmem>>, vector<32x32xbf16>
    %cst = arith.constant dense<0.000000e+00> : vector<8x32xf32>
    %8 = tpu.matmul %6, %7, %cst {dimension_numbers = #tpu.dot_dimension_numbers<[1], [0], [0], [1], [0, 0, 1, 1], [], []>} : vector<8x32xbf16>, vector<32x32xbf16>, vector<8x32xf32> -> vector<8x32xf32>
    %9 = arith.truncf %3 : vector<8x32xf32> to vector<8x32xbf16>
    %c0_10 = arith.constant 0 : index
    %c0_11 = arith.constant 0 : index
    %10 = vector.load %arg5[%c0_10, %c0_11] : memref<32x32xbf16, #tpu.memory_space<vmem>>, vector<32x32xbf16>
    %cst_12 = arith.constant dense<0.000000e+00> : vector<8x32xf32>
    %11 = tpu.matmul %9, %10, %cst_12 {dimension_numbers = #tpu.dot_dimension_numbers<[1], [0], [0], [1], [0, 0, 1, 1], [], []>} : vector<8x32xbf16>, vector<32x32xbf16>, vector<8x32xf32> -> vector<8x32xf32>
    %12 = arith.truncf %5 : vector<8x32xf32> to vector<8x32xbf16>
    %c0_13 = arith.constant 0 : index
    %c0_14 = arith.constant 0 : index
    %13 = vector.load %arg6[%c0_13, %c0_14] : memref<32x32xbf16, #tpu.memory_space<vmem>>, vector<32x32xbf16>
    %cst_15 = arith.constant dense<0.000000e+00> : vector<8x32xf32>
    %14 = tpu.matmul %12, %13, %cst_15 {dimension_numbers = #tpu.dot_dimension_numbers<[1], [0], [0], [1], [0, 0, 1, 1], [], []>} : vector<8x32xbf16>, vector<32x32xbf16>, vector<8x32xf32> -> vector<8x32xf32>
    %15 = vector.extract_strided_slice %8 {offsets = [0, 0], sizes = [8, 16], strides = [1, 1]} : vector<8x32xf32> to vector<8x16xf32>
    %16 = vector.shape_cast %15 : vector<8x16xf32> to vector<1x8x16xf32>
    %17 = arith.truncf %16 : vector<1x8x16xf32> to vector<1x8x16xbf16>
    %18 = vector.extract_strided_slice %11 {offsets = [0, 0], sizes = [8, 16], strides = [1, 1]} : vector<8x32xf32> to vector<8x16xf32>
    %19 = vector.shape_cast %18 : vector<8x16xf32> to vector<1x8x16xf32>
    %20 = arith.truncf %19 : vector<1x8x16xf32> to vector<1x8x16xbf16>
    %21 = vector.extract_strided_slice %14 {offsets = [0, 0], sizes = [8, 16], strides = [1, 1]} : vector<8x32xf32> to vector<8x16xf32>
    %22 = vector.shape_cast %21 : vector<8x16xf32> to vector<1x8x16xf32>
    %23 = arith.truncf %22 : vector<1x8x16xf32> to vector<1x8x16xbf16>
    "tpu.trace_start"() <{level = 10 : i32, message = "bqd,bkd->bqk"}> : () -> ()
    %cst_16 = arith.constant dense<0.000000e+00> : vector<1x8x8xf32>
    %24 = tpu.matmul %17, %20, %cst_16 {dimension_numbers = #tpu.dot_dimension_numbers<[2], [2], [1], [1], [0, 0, 0, 1, 1, 1], [0], [0]>} : vector<1x8x16xbf16>, vector<1x8x16xbf16>, vector<1x8x8xf32> -> vector<1x8x8xf32>
    "tpu.trace_stop"() : () -> ()
    %cst_17 = arith.constant 2.500000e-01 : f32
    %25 = vector.broadcast %cst_17 : f32 to vector<1x8x8xf32>
    %26 = arith.mulf %24, %25 : vector<1x8x8xf32>
    %cst_18 = arith.constant dense<0xFF800000> : vector<1x8xf32>
    %27 = vector.multi_reduction <maximumf>, %26, %cst_18 [2] : vector<1x8x8xf32> to vector<1x8xf32>
    %28 = vector.shape_cast %27 : vector<1x8xf32> to vector<1x8x1xf32>
    %29 = vector.broadcast %28 : vector<1x8x1xf32> to vector<1x8x8xf32>
    %30 = arith.subf %26, %29 : vector<1x8x8xf32>
    %31 = math.exp %30 : vector<1x8x8xf32>
    %cst_19 = arith.constant dense<0.000000e+00> : vector<1x8xf32>
    %32 = vector.multi_reduction <add>, %31, %cst_19 [2] : vector<1x8x8xf32> to vector<1x8xf32>
    %33 = vector.shape_cast %32 : vector<1x8xf32> to vector<1x8x1xf32>
    %34 = tpu.reciprocal %33 {approx = true} : vector<1x8x1xf32> -> vector<1x8x1xf32>
    %35 = vector.broadcast %34 : vector<1x8x1xf32> to vector<1x8x8xf32>
    %36 = arith.mulf %31, %35 : vector<1x8x8xf32>
    %37 = arith.truncf %36 : vector<1x8x8xf32> to vector<1x8x8xbf16>
    "tpu.trace_start"() <{level = 10 : i32, message = "bqk,bkd->bqd"}> : () -> ()
    %cst_20 = arith.constant dense<0.000000e+00> : vector<1x8x16xf32>
    %38 = tpu.matmul %37, %23, %cst_20 {dimension_numbers = #tpu.dot_dimension_numbers<[2], [1], [1], [2], [0, 0, 0, 1, 1, 2], [0], [0]>} : vector<1x8x8xbf16>, vector<1x8x16xbf16>, vector<1x8x16xf32> -> vector<1x8x16xf32>
    "tpu.trace_stop"() : () -> ()
    %39 = vector.extract_strided_slice %8 {offsets = [0, 16], sizes = [8, 16], strides = [1, 1]} : vector<8x32xf32> to vector<8x16xf32>
    %40 = vector.shape_cast %39 : vector<8x16xf32> to vector<1x8x16xf32>
    %41 = arith.truncf %40 : vector<1x8x16xf32> to vector<1x8x16xbf16>
    %42 = vector.extract_strided_slice %11 {offsets = [0, 16], sizes = [8, 16], strides = [1, 1]} : vector<8x32xf32> to vector<8x16xf32>
    %43 = vector.shape_cast %42 : vector<8x16xf32> to vector<1x8x16xf32>
    %44 = arith.truncf %43 : vector<1x8x16xf32> to vector<1x8x16xbf16>
    %45 = vector.extract_strided_slice %14 {offsets = [0, 16], sizes = [8, 16], strides = [1, 1]} : vector<8x32xf32> to vector<8x16xf32>
    %46 = vector.shape_cast %45 : vector<8x16xf32> to vector<1x8x16xf32>
    %47 = arith.truncf %46 : vector<1x8x16xf32> to vector<1x8x16xbf16>
    "tpu.trace_start"() <{level = 10 : i32, message = "bqd,bkd->bqk"}> : () -> ()
    %cst_21 = arith.constant dense<0.000000e+00> : vector<1x8x8xf32>
    %48 = tpu.matmul %41, %44, %cst_21 {dimension_numbers = #tpu.dot_dimension_numbers<[2], [2], [1], [1], [0, 0, 0, 1, 1, 1], [0], [0]>} : vector<1x8x16xbf16>, vector<1x8x16xbf16>, vector<1x8x8xf32> -> vector<1x8x8xf32>
    "tpu.trace_stop"() : () -> ()
    %cst_22 = arith.constant 2.500000e-01 : f32
    %49 = vector.broadcast %cst_22 : f32 to vector<1x8x8xf32>
    %50 = arith.mulf %48, %49 : vector<1x8x8xf32>
    %cst_23 = arith.constant dense<0xFF800000> : vector<1x8xf32>
    %51 = vector.multi_reduction <maximumf>, %50, %cst_23 [2] : vector<1x8x8xf32> to vector<1x8xf32>
    %52 = vector.shape_cast %51 : vector<1x8xf32> to vector<1x8x1xf32>
    %53 = vector.broadcast %52 : vector<1x8x1xf32> to vector<1x8x8xf32>
    %54 = arith.subf %50, %53 : vector<1x8x8xf32>
    %55 = math.exp %54 : vector<1x8x8xf32>
    %cst_24 = arith.constant dense<0.000000e+00> : vector<1x8xf32>
    %56 = vector.multi_reduction <add>, %55, %cst_24 [2] : vector<1x8x8xf32> to vector<1x8xf32>
    %57 = vector.shape_cast %56 : vector<1x8xf32> to vector<1x8x1xf32>
    %58 = tpu.reciprocal %57 {approx = true} : vector<1x8x1xf32> -> vector<1x8x1xf32>
    %59 = vector.broadcast %58 : vector<1x8x1xf32> to vector<1x8x8xf32>
    %60 = arith.mulf %55, %59 : vector<1x8x8xf32>
    %61 = arith.truncf %60 : vector<1x8x8xf32> to vector<1x8x8xbf16>
    "tpu.trace_start"() <{level = 10 : i32, message = "bqk,bkd->bqd"}> : () -> ()
    %cst_25 = arith.constant dense<0.000000e+00> : vector<1x8x16xf32>
    %62 = tpu.matmul %61, %47, %cst_25 {dimension_numbers = #tpu.dot_dimension_numbers<[2], [1], [1], [2], [0, 0, 0, 1, 1, 2], [0], [0]>} : vector<1x8x8xbf16>, vector<1x8x16xbf16>, vector<1x8x16xf32> -> vector<1x8x16xf32>
    "tpu.trace_stop"() : () -> ()
    %63 = vector.shape_cast %36 : vector<1x8x8xf32> to vector<1x1x8x8xf32>
    %64 = vector.shape_cast %60 : vector<1x8x8xf32> to vector<1x1x8x8xf32>
    %65 = tpu.concatenate %63, %64 in 1 : vector<1x1x8x8xf32>, vector<1x1x8x8xf32> -> vector<1x2x8x8xf32>
    %c0_26 = arith.constant 0 : index
    %c0_27 = arith.constant 0 : index
    %c0_28 = arith.constant 0 : index
    %c0_29 = arith.constant 0 : index
    %66 = vector.load %arg11[%c0_26, %c0_27, %c0_28, %c0_29] : memref<1x2x8x8xf32, #tpu.memory_space<vmem>>, vector<1x2x8x8xf32>
    tpu.vector_store %arg11[%c0_26, %c0_27, %c0_28, %c0_29], %65 {strides = array<i32>} : memref<1x2x8x8xf32, #tpu.memory_space<vmem>>, vector<1x2x8x8xf32>,
    %67 = tpu.concatenate %38, %62 in 2 : vector<1x8x16xf32>, vector<1x8x16xf32> -> vector<1x8x32xf32>
    %68 = vector.shape_cast %67 : vector<1x8x32xf32> to vector<8x32xf32>
    %69 = arith.truncf %68 : vector<8x32xf32> to vector<8x32xbf16>
    %c0_30 = arith.constant 0 : index
    %c0_31 = arith.constant 0 : index
    %70 = vector.load %arg7[%c0_30, %c0_31] : memref<32x32xbf16, #tpu.memory_space<vmem>>, vector<32x32xbf16>
    %cst_32 = arith.constant dense<0.000000e+00> : vector<8x32xf32>
    %71 = tpu.matmul %69, %70, %cst_32 {dimension_numbers = #tpu.dot_dimension_numbers<[1], [0], [0], [1], [0, 0, 1, 1], [], []>} : vector<8x32xbf16>, vector<32x32xbf16>, vector<8x32xf32> -> vector<8x32xf32>
    %72 = arith.addf %71, %1 : vector<8x32xf32>
    %cst_33 = arith.constant dense<0.000000e+00> : vector<8xf32>
    %73 = vector.multi_reduction <add>, %72, %cst_33 [1] : vector<8x32xf32> to vector<8xf32>
    %74 = vector.shape_cast %73 : vector<8xf32> to vector<8x1xf32>
    %cst_34 = arith.constant 3.200000e+01 : f32
    %75 = vector.broadcast %cst_34 : f32 to vector<8x1xf32>
    %76 = arith.divf %74, %75 : vector<8x1xf32>
    %77 = vector.broadcast %76 : vector<8x1xf32> to vector<8x32xf32>
    %78 = arith.subf %72, %77 : vector<8x32xf32>
    %79 = arith.mulf %78, %78 : vector<8x32xf32>
    %cst_35 = arith.constant dense<0.000000e+00> : vector<8xf32>
    %80 = vector.multi_reduction <add>, %79, %cst_35 [1] : vector<8x32xf32> to vector<8xf32>
    %81 = vector.shape_cast %80 : vector<8xf32> to vector<8x1xf32>
    %cst_36 = arith.constant 3.200000e+01 : f32
    %82 = vector.broadcast %cst_36 : f32 to vector<8x1xf32>
    %83 = arith.divf %81, %82 : vector<8x1xf32>
    %84 = vector.broadcast %76 : vector<8x1xf32> to vector<8x32xf32>
    %85 = arith.subf %72, %84 : vector<8x32xf32>
    %cst_37 = arith.constant 9.99999974E-6 : f32
    %86 = vector.broadcast %cst_37 : f32 to vector<8x1xf32>
    %87 = arith.addf %83, %86 : vector<8x1xf32>
    %88 = math.rsqrt %87 : vector<8x1xf32>
    %89 = vector.broadcast %88 : vector<8x1xf32> to vector<8x32xf32>
    %90 = arith.mulf %85, %89 : vector<8x32xf32>
    %c0_38 = arith.constant 0 : index
    %c0_39 = arith.constant 0 : index
    %91 = vector.load %arg8[%c0_38, %c0_39] : memref<1x32xf32, #tpu.memory_space<vmem>>, vector<1x32xf32>
    %92 = vector.broadcast %91 : vector<1x32xf32> to vector<8x32xf32>
    %93 = arith.mulf %90, %92 : vector<8x32xf32>
    %c0_40 = arith.constant 0 : index
    %c0_41 = arith.constant 0 : index
    %94 = vector.load %arg9[%c0_40, %c0_41] : memref<1x32xf32, #tpu.memory_space<vmem>>, vector<1x32xf32>
    %95 = vector.broadcast %94 : vector<1x32xf32> to vector<8x32xf32>
    %96 = arith.addf %93, %95 : vector<8x32xf32>
    %97 = vector.shape_cast %96 : vector<8x32xf32> to vector<1x8x32xf32>
    %c0_42 = arith.constant 0 : index
    %c0_43 = arith.constant 0 : index
    %c0_44 = arith.constant 0 : index
    %98 = vector.load %arg10[%c0_42, %c0_43, %c0_44] : memref<1x8x32xf32, #tpu.memory_space<vmem>>, vector<1x8x32xf32>
    tpu.vector_store %arg10[%c0_42, %c0_43, %c0_44], %97 {strides = array<i32>} : memref<1x8x32xf32, #tpu.memory_space<vmem>>, vector<1x8x32xf32>,
    return
  }
  func.func @transform_0(%arg0: i32) -> (i32, i32, i32) {
    %c0_i32 = arith.constant 0 : i32
    %c0_i32_0 = arith.constant 0 : i32
    %c0_i32_1 = arith.constant 0 : i32
    return %arg0, %c0_i32, %c0_i32_0 : i32, i32, i32
  }
  func.func @transform_1(%arg0: i32) -> (i32, i32, i32) {
    %c0_i32 = arith.constant 0 : i32
    %c0_i32_0 = arith.constant 0 : i32
    %c0_i32_1 = arith.constant 0 : i32
    return %arg0, %c0_i32, %c0_i32_0 : i32, i32, i32
  }
  func.func @transform_2(%arg0: i32) -> (i32, i32, i32) {
    %c0_i32 = arith.constant 0 : i32
    %c0_i32_0 = arith.constant 0 : i32
    %c0_i32_1 = arith.constant 0 : i32
    return %arg0, %c0_i32, %c0_i32_0 : i32, i32, i32
  }
  func.func @transform_3(%arg0: i32) -> (i32, i32) {
    %c0_i32 = arith.constant 0 : i32
    %c0_i32_0 = arith.constant 0 : i32
    %c0_i32_1 = arith.constant 0 : i32
    return %c0_i32, %c0_i32_0 : i32, i32
  }
  func.func @transform_4(%arg0: i32) -> (i32, i32) {
    %c0_i32 = arith.constant 0 : i32
    %c0_i32_0 = arith.constant 0 : i32
    %c0_i32_1 = arith.constant 0 : i32
    return %c0_i32, %c0_i32_0 : i32, i32
  }
  func.func @transform_5(%arg0: i32) -> (i32, i32) {
    %c0_i32 = arith.constant 0 : i32
    %c0_i32_0 = arith.constant 0 : i32
    %c0_i32_1 = arith.constant 0 : i32
    return %c0_i32, %c0_i32_0 : i32, i32
  }
  func.func @transform_6(%arg0: i32) -> (i32, i32) {
    %c0_i32 = arith.constant 0 : i32
    %c0_i32_0 = arith.constant 0 : i32
    %c0_i32_1 = arith.constant 0 : i32
    return %c0_i32, %c0_i32_0 : i32, i32
  }
  func.func @transform_7(%arg0: i32) -> (i32, i32) {
    %c0_i32 = arith.constant 0 : i32
    %c0_i32_0 = arith.constant 0 : i32
    %c0_i32_1 = arith.constant 0 : i32
    return %c0_i32, %c0_i32_0 : i32, i32
  }
  func.func @transform_8(%arg0: i32) -> (i32, i32) {
    %c0_i32 = arith.constant 0 : i32
    %c0_i32_0 = arith.constant 0 : i32
    %c0_i32_1 = arith.constant 0 : i32
    return %c0_i32, %c0_i32_0 : i32, i32
  }
  func.func @transform_9(%arg0: i32) -> (i32, i32, i32) {
    %c0_i32 = arith.constant 0 : i32
    %c0_i32_0 = arith.constant 0 : i32
    %c0_i32_1 = arith.constant 0 : i32
    return %arg0, %c0_i32, %c0_i32_0 : i32, i32, i32
  }
  func.func @transform_10(%arg0: i32) -> (i32, i32, i32, i32) {
    %c0_i32 = arith.constant 0 : i32
    %c0_i32_0 = arith.constant 0 : i32
    %c0_i32_1 = arith.constant 0 : i32
    %c0_i32_2 = arith.constant 0 : i32
    return %arg0, %c0_i32, %c0_i32_0, %c0_i32_1 : i32, i32, i32, i32
  }
}

</mosaic_0001>

<bundles_post_ra>
// kernel: tpu_custom_call.1
= control target key start
LH: loop header
LB: loop body
LE: loop exit
PB: predicated region body
PF: predicated region fallthrough
CT: control target
= control target key end

     0   :  { %s2261_s0 = inlined_call_operand.hbm [shape: f32[2,8,32], index: 0, kind: input, shape index: {}]   ;;  %s2262_s1 = inlined_call_operand.hbm [shape: f32[2,8,32], index: 1, kind: input, shape index: {}]   ;;  %s2263_s2 = inlined_call_operand.hbm [shape: f32[2,8,32], index: 2, kind: input, shape index: {}]   ;;  %s2264_s3 = inlined_call_operand.hbm [shape: bf16[32,32], index: 3, kind: input, shape index: {}]   ;;  %s2265_s4 = inlined_call_operand.hbm [shape: bf16[32,32], index: 4, kind: input, shape index: {}]   ;;  %s2266_s5 = inlined_call_operand.vmem [shape: bf16[32,32], index: 5, kind: input, shape index: {}]   ;;  %s2267_s6 = inlined_call_operand.hbm [shape: bf16[32,32], index: 6, kind: input, shape index: {}]   ;;  %s2268_s7 = inlined_call_operand.vmem [shape: f32[1,32], index: 7, kind: input, shape index: {}]   ;;  %s2269_s8 = inlined_call_operand.vmem [shape: f32[1,32], index: 8, kind: input, shape index: {}]   ;;  %s2270_s9 = inlined_call_operand.hbm [shape: f32[2,8,32], index: 9, kind: output, shape index: {0}]   ;;  %s2271_s10 = inlined_call_operand.hbm [shape: f32[2,2,8,8], index: 10, kind: output, shape index: {1}]  }
   0x1   :  { %2296 = sst [smem:[#allocation27_spill]] %s2262_s1 }
   0x2   :  { %2297 = sst [smem:[#allocation28_spill]] %s2264_s3 }
   0x3   :  { %2298 = sst [smem:[#allocation29_spill]] %s2268_s7 }
   0x4   :  { %2299 = sst [smem:[#allocation30_spill]] %s2269_s8 }
   0x5   :  { %2300 = sst [smem:[#allocation31_spill]] %s2270_s9 }
   0x6   :  { %2301 = sst [smem:[#allocation32_spill]] %s2271_s10 }
   0x7   :  { %16 = vsyncpa [#allocation3], 0 }
   0x8   :  { %18 = vsyncpa [#allocation3 + $0x1], 0 }
   0x9   :  { %19 = vsyncpa [#allocation6], 0 }
   0xa   :  { %21 = vsyncpa [#allocation6 + $0x1], 0 }
   0xb   :  { %22 = vsyncpa [#allocation9], 0 }
   0xc   :  { %23 = vsyncpa [#allocation12], 0 }
   0xd   :  { %24 = vsyncpa [#allocation4], 0 }
   0xe   :  { %26 = vsyncpa [#allocation4 + $0x1], 0 }
   0xf   :  { %27 = vsyncpa [#allocation15], 0 }
  0x10   :  { %29 = vsyncpa [#allocation15 + $0x1], 0  ;;  %s1816_s13 = smov 0   ;;  %s1818_s14 = smov 0  }
  0x11   :  { %s1820_s15 = smov 0   ;;  %s1822_s16 = smov 0  }
  0x12 LB: > { %2302 = sst [smem:[#allocation22_spill]] %s1731_s13  ;;  %s1837_s17 = sadd.s32 4294967295, %s1743_s16   ;;  %s1743_s16 = sphi %s1822_s16, %s2342_s16   ;;  %s1739_s15 = sphi %s1820_s15, %s2346_s15   ;;  %s1735_s14 = sphi %s1818_s14, %s2345_s14   ;;  %s1731_s13 = sphi %s1816_s13, %s2344_s13  }
  0x13   : > { %2303 = sst [smem:[#allocation23_spill]] %s1743_s16  ;;  %s1218_s18 = sadd.s32 4294967294, %s1743_s16  }
  0x14   : > { %p55_p0 = scmp.ne.s32.totalorder %s1735_s14, %s1731_s13  ;;  %p2273_p1 = scmp.eq.s32.totalorder %s1837_s17, 0 }
  0x15   : > { %p263_p3 = scmp.eq.s32.totalorder %s1218_s18, 1  ;;  %p1219_p5 = scmp.ge.s32.totalorder %s1743_s16, 1 }
  0x16   : > { %p1846_p4 = por %p2273_p1, %p55_p0  ;;  %p296_p7 = scmp.lt.s32.totalorder %s1743_s16, 3 }
  0x17   : > { %p1851_p6 = por %p263_p3, %p55_p0  ;;  %s1745_s22 = smov [#allocation8]  }
  0x18   : > { %s2304_s19 = scalar_select %p1846_p4, 1, 0 }
  0x19   : > { %s2305_s20 = scalar_select %p1851_p6, 1, 0 }
  0x1a   : > { %p1856_p8 = pnand %p1219_p5, %p296_p7  ;;  %s308_s23 = sshll.u32 %s1745_s22, 4  ;;  %s1860_s23 = int_to_ptr.vmem [resolvable:$true] %s308_s23 }
  0x1b   : > { %2306 = sst [smem:[#allocation24_spill]] %s2305_s20  ;;  %s1872_s25 = sadd.s32 1, %s1743_s16  }
  0x1c   : > { %s2307_s21 = scalar_select %p1856_p8, 1, 0 }
  0x1d   : > { %p1363_p9 = pneg %p1856_p8  ;;  %2309 = sst [smem:[#allocation25_spill]] %s1872_s25 }
  0x1e   : > { %s42_s26 = sadd.s32 1, %s1739_s15  ;;  %s39_s27 = ssub.s32 %s1743_s16, %s1872_s25 }
  0x1f   : > { %p1867_p11 = pnand %p1363_p9, %p2273_p1  ;;  %s2310_s3 = sld [smem:[#allocation28_spill]] }
  0x21   : > { %s2308_s24 = scalar_select %p1867_p11, 1, 0 }
  0x22   : > { %p1885_p13 = pneg %p1867_p11 }
  0x24   : > { %s2311_s18 = scalar_select %p1885_p13, 1, 0 }
  0x25   : > { %s1459_s30 = scalar_lea.hbm %s2310_s3, 256 }
  0x26   : > { %p1460_p12 = scmp.ne.s32.totalorder %s2310_s3, %s1459_s30  ;;  %p1466_p5 = scmp.lt.u32.totalorder %s1459_s30, %s2310_s3 }
  0x28   : > { %p1462_p0 = pnand %p1885_p13, %p1460_p12 }
  0x2a   : > { %p1463_p3 = pneg %p1462_p0 }
  0x2c   : > { %p1468_p7 = pnand %p1466_p5, %p1463_p3 }
  0x2e   : > { %1471 = shalt.err (!%p1468_p7)
}
  0x2f   : > { %s1472_s28 = scalar_lea.vmem %s1860_s23, 256  ;;  %p1480_p2 = scmp.lt.s32.totalorder %s1860_s23, %s1860_s23 }
  0x30   : > { %p1473_p9 = scmp.ne.s32.totalorder %s1860_s23, %s1472_s28  ;;  %p1481_p6 = scmp.lt.s32.totalorder %s1472_s28, %s1472_s28 }
  0x32   : > { %p1475_p10 = pnand %p1473_p9, %p1885_p13  ;;  %p1482_p12 = por %p1481_p6, %p1480_p2 }
  0x34   : > { %p1476_p1 = pneg %p1475_p10 }
  0x36   : > { %p1483_p0 = pnand %p1482_p12, %p1476_p1 }
  0x38   : > { %1486 = shalt.err (!%p1483_p0)
}
  0x39   : > { %s2277_s29 = smov 64   ;;  %s2279_s20 = smov 4  }
  0x3a   : > { %1366 = dma.hbm_to_vmem [thread:$0]  (!%p1867_p11), %s2310_s3, 256, %s1860_s23, [#allocation9], %s2277_s29, %s2277_s29, %s2279_s20  }
  0x3b   : > { %p40_p1 = scmp.eq.s32.totalorder %s39_s27, 0  ;;  %p49_p2 = scmp.ne.s32.totalorder %s1739_s15, %s1735_s14 }
  0x3c   : > { %p50_p6 = scmp.eq.s32.totalorder %s1743_s16, 0  ;;  %p1393_p10 = scmp.lt.s32.totalorder %s1743_s16, 2 }
  0x3d   : > { %s1914_s12 = scalar_select %p40_p1, %s1739_s15, %s42_s26  }
  0x3e   : > { %p51_p3 = por %p50_p6, %p49_p2  ;;  %p2313_p5 = scmp.eq.s32.totalorder %s1837_s17, 1 }
  0x3f   : > { %2312 = sst [smem:[#allocation26_spill]] %s1914_s12  ;;  %s2281_s28 = sand.u32 1, %s1739_s15  }
  0x40   : > { %p1918_p7 = por %p2313_p5, %p49_p2  ;;  %s1924_s25 = sshll.u32 %s1743_s16, 7 }
  0x41   : > { %s1928_s13 = sshll.u32 %s2281_s28, 3  ;;  %p1930_p9 = pnand %p1393_p10, %p51_p3 }
  0x42   : > { %s2314_s22 = scalar_select %p1918_p7, 1, 0 }
  0x43   : > { %s2315_s23 = scalar_select %p1930_p9, 1, 0 }
  0x44   : > { %s375_s26 = sand.u32 1, %s1743_s16   ;;  %s2316_s1 = sld [smem:[#allocation27_spill]] }
  0x45   : > { %s379_s29 = scalar_lea.vmem [#allocation5], %s1928_s13  ;;  %s1944_s28 = scalar_lea.sflag [#allocation6], %s375_s26 }
  0x46   : > { %s386_s20 = sshll.u32 %s379_s29, 4  ;;  %p1950_p0 = pneg %p1930_p9  ;;  %s1942_s20 = int_to_ptr.vmem [resolvable:$true] %s386_s20 }
  0x48   : > { %s2317_s12 = scalar_select %p1950_p0, 1, 0 }
  0x4a   : > { %s1939_s11 = scalar_lea.hbm %s2316_s1, %s1924_s25  ;;  %s1492_s16 = scalar_lea.hbm %s2316_s1, 256 }
  0x4b   : > { %s1487_s3 = scalar_lea.hbm %s1939_s11, 128  ;;  %p1493_p6 = scmp.lt.u32.totalorder %s1939_s11, %s2316_s1 }
  0x4c   : > { %p1488_p12 = scmp.ne.s32.totalorder %s1939_s11, %s1487_s3  ;;  %p1494_p10 = scmp.lt.u32.totalorder %s1492_s16, %s1487_s3 }
  0x4d   : > { %p1496_p5 = scmp.lt.u32.totalorder %s1487_s3, %s1939_s11 }
  0x4e   : > { %p1490_p1 = pnand %p1950_p0, %p1488_p12  ;;  %p1495_p3 = por %p1494_p10, %p1493_p6 }
  0x50   : > { %p1491_p2 = pneg %p1490_p1  ;;  %p1497_p7 = por %p1496_p5, %p1495_p3 }
  0x52   : > { %p1498_p4 = pnand %p1497_p7, %p1491_p2 }
  0x54   : > { %1501 = shalt.err (!%p1498_p4)
}
  0x55   : > { %s1502_s26 = scalar_lea.vmem %s1942_s20, 128  ;;  %s1748_s27 = smov [#allocation5]  }
  0x56   : > { %p1503_p12 = scmp.ne.s32.totalorder %s1942_s20, %s1502_s26  ;;  %s1507_s30 = sshll.u32 %s1748_s27, 4  ;;  %s1508_s30 = int_to_ptr.vmem [resolvable:$false] %s1507_s30 }
  0x57   : > { %s1509_s9 = scalar_lea.vmem %s1508_s30, 256  ;;  %p1510_p11 = scmp.lt.s32.totalorder %s1942_s20, %s1508_s30 }
  0x58   : > { %p1505_p1 = pnand %p1503_p12, %p1950_p0  ;;  %p1511_p13 = scmp.lt.s32.totalorder %s1509_s9, %s1502_s26 }
  0x5a   : > { %p1506_p8 = pneg %p1505_p1  ;;  %p1512_p6 = por %p1511_p13, %p1510_p11 }
  0x5c   : > { %p1513_p10 = pnand %p1512_p6, %p1506_p8 }
  0x5e   : > { %1516 = shalt.err (!%p1513_p10)
}
  0x5f   : > { %1379 = dma.hbm_to_vmem [thread:$0]  (!%p1930_p9), %s1939_s11, 128, %s1942_s20, %s1944_s28  }
  0x60   : > { %s1749_s3 = smov [#allocation10]   ;;  %s1750_s29 = smov [#allocation11]  }
  0x61   : > { %s321_s16 = sshll.u32 %s1749_s3, 4  ;;  %s337_s1 = sshll.u32 %s1750_s29, 4  ;;  %s322_s16 = int_to_ptr.vmem [resolvable:$true] %s321_s16  ;;  %s338_s1 = int_to_ptr.vmem [resolvable:$true] %s337_s1 }
  0x62   : > { %s1517_s30 = scalar_lea.hbm %s2265_s4, 256  ;;  %p2318_p8 = scmp.ne.s32.totalorder %s2311_s18, 0 }
  0x63   : > { %p1518_p4 = scmp.ne.s32.totalorder %s2265_s4, %s1517_s30  ;;  %p1524_p7 = scmp.lt.u32.totalorder %s1517_s30, %s2265_s4 }
  0x65   : > { %p1520_p11 = pnand %p1518_p4, %p2318_p8 }
  0x67   : > { %p1521_p13 = pneg %p1520_p11 }
  0x69   : > { %p1526_p2 = pnand %p1524_p7, %p1521_p13 }
  0x6b   : > { %1529 = shalt.err (!%p1526_p2)
}
  0x6c   : > { %s1530_s20 = scalar_lea.vmem %s322_s16, 256  ;;  %p1538_p1 = scmp.lt.s32.totalorder %s322_s16, %s322_s16 }
  0x6d   : > { %p1531_p3 = scmp.ne.s32.totalorder %s322_s16, %s1530_s20  ;;  %p1539_p6 = scmp.lt.s32.totalorder %s1530_s20, %s1530_s20 }
  0x6f   : > { %p1533_p5 = pnand %p1531_p3, %p2318_p8  ;;  %p1540_p10 = por %p1539_p6, %p1538_p1 }
  0x71   : > { %p1534_p12 = pneg %p1533_p5 }
  0x73   : > { %p1541_p9 = pnand %p1540_p10, %p1534_p12 }
  0x75   : > { %1544 = shalt.err (!%p1541_p9)
}
  0x76   : > { %p2319_p4 = scmp.ne.s32.totalorder %s2308_s24, 0  ;;  %s2320_s8 = smov 4  }
  0x77   : > { %s2321_s11 = smov 64   ;;  %s1545_s27 = scalar_lea.hbm %s2267_s6, 256 }
  0x78   : > { %1369 = dma.hbm_to_vmem [thread:$0]  (!%p2319_p4), %s2265_s4, 256, %s322_s16, [#allocation9], %s2321_s11, %s2321_s11, %s2320_s8  }
  0x79   : > { %p1546_p11 = scmp.ne.s32.totalorder %s2267_s6, %s1545_s27  ;;  %p1552_p7 = scmp.lt.u32.totalorder %s1545_s27, %s2267_s6 }
  0x7b   : > { %p1548_p9 = pnand %p1546_p11, %p2318_p8 }
  0x7d   : > { %p1549_p13 = pneg %p1548_p9 }
  0x7f   : > { %p1554_p2 = pnand %p1552_p7, %p1549_p13 }
  0x81   : > { %1557 = shalt.err (!%p1554_p2)
}
  0x82   : > { %s1558_s7 = scalar_lea.vmem %s338_s1, 256  ;;  %p1566_p1 = scmp.lt.s32.totalorder %s338_s1, %s338_s1 }
  0x83   : > { %p1559_p3 = scmp.ne.s32.totalorder %s338_s1, %s1558_s7  ;;  %p1567_p6 = scmp.lt.s32.totalorder %s1558_s7, %s1558_s7 }
  0x85   : > { %p1561_p5 = pnand %p1559_p3, %p2318_p8  ;;  %p1568_p10 = por %p1567_p6, %p1566_p1 }
  0x87   : > { %p1562_p12 = pneg %p1561_p5 }
  0x89   : > { %p1569_p0 = pnand %p1568_p10, %p1562_p12 }
  0x8b   : > { %1572 = shalt.err (!%p1569_p0)
}
  0x8c   : > { %1372 = dma.hbm_to_vmem [thread:$0]  (!%p2319_p4), %s2267_s6, 256, %s338_s1, [#allocation12], %s2321_s11, %s2321_s11, %s2320_s8  }
  0x8d   : > { %s2020_s29 = scalar_lea.hbm %s2261_s0, %s1924_s25  ;;  %s361_s24 = scalar_lea.vmem [#allocation2], %s1928_s13 }
  0x8e   : > { %s368_s27 = sshll.u32 %s361_s24, 4  ;;  %s2029_s9 = scalar_lea.hbm %s2263_s2, %s1924_s25  ;;  %s2023_s27 = int_to_ptr.vmem [resolvable:$true] %s368_s27 }
  0x8f   : > { %s2322_s20 = sand.u32 1, %s1739_s15   ;;  %s1573_s8 = scalar_lea.hbm %s2020_s29, 128 }
  0x90   : > { %s358_s1 = scalar_lea.sflag [#allocation3], %s2322_s20  ;;  %p1574_p0 = scmp.ne.s32.totalorder %s2020_s29, %s1573_s8 }
  0x91   : > { %p2323_p8 = scmp.ne.s32.totalorder %s2317_s12, 0  ;;  %s1578_s16 = scalar_lea.hbm %s2261_s0, 256 }
  0x92   : > { %p1579_p9 = scmp.lt.u32.totalorder %s2020_s29, %s2261_s0  ;;  %p1580_p13 = scmp.lt.u32.totalorder %s1578_s16, %s1573_s8 }
  0x93   : > { %p1576_p4 = pnand %p1574_p0, %p2323_p8  ;;  %p1582_p2 = scmp.lt.u32.totalorder %s1573_s8, %s2020_s29 }
  0x94   : > { %p1581_p7 = por %p1580_p13, %p1579_p9 }
  0x95   : > { %p1577_p11 = pneg %p1576_p4 }
  0x96   : > { %p1583_p3 = por %p1582_p2, %p1581_p7 }
  0x98   : > { %p1584_p5 = pnand %p1583_p3, %p1577_p11 }
  0x9a   : > { %1587 = shalt.err (!%p1584_p5)
}
  0x9b   : > { %s1588_s25 = scalar_lea.vmem %s2023_s27, 128  ;;  %s1751_s3 = smov [#allocation2]  }
  0x9c   : > { %p1589_p12 = scmp.ne.s32.totalorder %s2023_s27, %s1588_s25  ;;  %s1593_s24 = sshll.u32 %s1751_s3, 4  ;;  %s1594_s24 = int_to_ptr.vmem [resolvable:$false] %s1593_s24 }
  0x9d   : > { %s1595_s30 = scalar_lea.vmem %s1594_s24, 256  ;;  %p1596_p10 = scmp.lt.s32.totalorder %s2023_s27, %s1594_s24 }
  0x9e   : > { %p1591_p1 = pnand %p1589_p12, %p2323_p8  ;;  %p1597_p0 = scmp.lt.s32.totalorder %s1595_s30, %s1588_s25 }
  0xa0   : > { %p1592_p6 = pneg %p1591_p1  ;;  %p1598_p4 = por %p1597_p0, %p1596_p10 }
  0xa2   : > { %p1599_p9 = pnand %p1598_p4, %p1592_p6 }
  0xa4   : > { %1602 = shalt.err (!%p1599_p9)
}
  0xa5   : > { %p2324_p11 = scmp.ne.s32.totalorder %s2315_s23, 0  ;;  %s397_s26 = scalar_lea.vmem [#allocation7], %s1928_s13 }
  0xa6   : > { %s404_s20 = sshll.u32 %s397_s26, 4  ;;  %s1603_s8 = scalar_lea.hbm %s2029_s9, 128  ;;  %s405_s20 = int_to_ptr.vmem [resolvable:$true] %s404_s20 }
  0xa7   : > { %1376 = dma.hbm_to_vmem [thread:$0]  (!%p2324_p11), %s2020_s29, 128, %s2023_s27, %s358_s1  }
  0xa8   : > { %p1604_p13 = scmp.ne.s32.totalorder %s2029_s9, %s1603_s8  ;;  %s1608_s16 = scalar_lea.hbm %s2263_s2, 256 }
  0xa9   : > { %p1609_p3 = scmp.lt.u32.totalorder %s2029_s9, %s2263_s2  ;;  %p1610_p5 = scmp.lt.u32.totalorder %s1608_s16, %s1603_s8 }
  0xaa   : > { %p1606_p7 = pnand %p1604_p13, %p2323_p8  ;;  %p1612_p1 = scmp.lt.u32.totalorder %s1603_s8, %s2029_s9 }
  0xab   : > { %p1611_p12 = por %p1610_p5, %p1609_p3 }
  0xac   : > { %p1607_p2 = pneg %p1606_p7 }
  0xad   : > { %p1613_p6 = por %p1612_p1, %p1611_p12 }
  0xaf   : > { %p1614_p10 = pnand %p1613_p6, %p1607_p2 }
  0xb1   : > { %1617 = shalt.err (!%p1614_p10)
}
  0xb2   : > { %s1618_s13 = scalar_lea.vmem %s405_s20, 128  ;;  %s1752_s29 = smov [#allocation7]  }
  0xb3   : > { %p1619_p0 = scmp.ne.s32.totalorder %s405_s20, %s1618_s13  ;;  %s1623_s27 = sshll.u32 %s1752_s29, 4  ;;  %s1624_s27 = int_to_ptr.vmem [resolvable:$false] %s1623_s27 }
  0xb4   : > { %s1625_s1 = scalar_lea.vmem %s1624_s27, 256  ;;  %p1626_p13 = scmp.lt.s32.totalorder %s405_s20, %s1624_s27 }
  0xb5   : > { %p1621_p4 = pnand %p1619_p0, %p2323_p8  ;;  %p1627_p7 = scmp.lt.s32.totalorder %s1625_s1, %s1618_s13 }
  0xb7   : > { %p1622_p9 = pneg %p1621_p4  ;;  %p1628_p11 = por %p1627_p7, %p1626_p13 }
  0xb9   : > { %p1629_p3 = pnand %p1628_p11, %p1622_p9 }
  0xbb   : > { %1632 = shalt.err (!%p1629_p3)
}
  0xbc   : > { %p2325_p5 = scmp.ne.s32.totalorder %s2315_s23, 0  ;;  %p2326_p2 = scmp.ne.s32.totalorder %s2307_s21, 0 }
  0xbd   : > { %s2076_s12 = sand.u32 (!%p2326_p2), 1, %s1735_s14   ;;  %p2327_p8 = scmp.ne.s32.totalorder (!%p2326_p2), %s2304_s19, 0 }
  0xbe   : > { %1382 = dma.hbm_to_vmem [thread:$0]  (!%p2325_p5), %s2029_s9, 128, %s405_s20, %s1944_s28  }
  0xbf   : > { %413 = sbr.rel (%p2326_p2) target bundleno = 1956 (0x7a4), region = 56  ;;  %s2079_s25 = sshll.u32 (!%p2326_p2), %s2076_s12, 3 }
  0xc0   : > { %s416_s3 = scalar_lea.sflag (!%p2326_p2), [#allocation3], %s2076_s12  ;;  %s419_s24 = scalar_lea.vmem (!%p2326_p2), [#allocation2], %s2079_s25 }
  0xc6   : > { %1706 = dma.done.wait (%p2327_p8), %s416_s3, 128  }
  0xc7   : > { %1708 = vsyncadd (%p2327_p8), %s416_s3, 4294967168  ;;  %s424_s21 = sand.u32 1, %s1837_s17   ;;  %s428_s23 = scalar_lea.vmem [#allocation5], %s2079_s25 }
  0xc8   : > { %s425_s28 = scalar_lea.sflag [#allocation6], %s424_s21 }
  0xc9   : > { %1710 = dma.done.wait (%p2327_p8), %s425_s28, 256  }
  0xca   : > { %1712 = vsyncadd (%p2327_p8), %s425_s28, 4294967040  ;;  %s437_s9 = scalar_lea.vmem [#allocation7], %s2079_s25  ;;  %p2328_p11 = scmp.eq.s32.totalorder %s1837_s17, 0 }
  0xcc   : > { %1714 = dma.done.wait (%p2328_p11), [#allocation9], 512   ;;  %p2329_p12 = pmov %p2328_p11 }
  0xcd   : > { %p2330_p1 = pmov %p2328_p11 }
  0xce   : > { %1716 = vsyncadd (%p2329_p12), [#allocation9], 4294966784 }
  0xcf   : > { %1718 = dma.done.wait (%p2330_p1), [#allocation12], 256   ;;  %p2331_p6 = pmov %p2330_p1 }
  0xd0   : > { %v1753_v0 = vmov 0.0   ;;  %vm1754_vm0 = vmmov 0   ;;  %v1441_v1 = vld [vmem:[#allocation10] sm:$0xff]   ;;  %v1442_v2 = vld [vmem:[#allocation10 + $0x8] sm:$0xff]   ;;  %v1443_v3 = vld [vmem:[#allocation8] sm:$0xff]   ;;  %vm522_vm1 = vcmask 261120  }
  0xd1   : > { %1720 = vsyncadd (%p2331_p6), [#allocation12], 4294967040  ;;  %1293 = vmatprep.subr.bf16.mxu1 %v1753_v0  ;;  %1285 = vmatprep.subr.bf16.mxu0 %v1753_v0  ;;  %v503_v4 = vld [vmem:[%s428_s23] sm:$0xff]  ;;  %v2109_v6 = vld [vmem:[%s419_s24] sm:$0xff]  ;;  %vm689_vm2 = vcmask 130048   ;;  %s1755_s19 = smov 112  }
  0xd2   : > { %1297 = vmatprep.mubr.msk.bf16.mxu1 %vm1754_vm0, %v1753_v0  ;;  %1289 = vmatprep.mubr.msk.bf16.mxu0 %vm1754_vm0, %v1753_v0  ;;  %v1444_v5 = vld [vmem:[#allocation8 + $0x8] sm:$0xff]   ;;  %v566_v7 = vpack.c.bf16 %v503_v4, %v503_v4  ;;  %v505_v8 = vpack.c.bf16 %v2109_v6, %v2109_v6  ;;  %v1445_v20 = vld [vmem:[%s2266_s5] sm:$0xff]   ;;  %v1446_v21 = vld [vmem:[%s2266_s5 + $0x8] sm:$0xff]   ;;  %vm737_vm3 = vcmask 64512   ;;  %vm753_vm4 = vcmask 1043456   ;;  %s1238_s11 = sshll.u32 %s2076_s12, 4 }
  0xd3   : > { %1294 = vmatpush3.bf16.msra.mxu1 %v1441_v1  ;;  %1286 = vmatpush3.bf16.msra.mxu0 %v1443_v3  ;;  %v504_v22 = vld [vmem:[%s437_s9] sm:$0xff]  ;;  %s2155_s7 = scalar_lea.vmem [#allocation14], %s1238_s11  ;;  %s1756_s16 = smov 16  }
  0xd4   : > { %1295 = vmatprep.subr.bf16.mxu1 %v1753_v0  ;;  %1287 = vmatprep.subr.bf16.mxu0 %v1753_v0  ;;  %v626_v23 = vpack.c.bf16 %v504_v22, %v504_v22  ;;  %s1264_s10 = sshll.u32 %s1837_s17, 8  ;;  %s1041_s18 = sshll.u32 %s2155_s7, 4  ;;  %s2179_s18 = int_to_ptr.vmem [resolvable:$true] %s1041_s18 }
  0xd5   : > { %s2332_s27 = sld [smem:[#allocation32_spill]]  ;;  %s1015_s3 = scalar_lea.sflag [#allocation15], %s2076_s12 }
  0xd6   : > { %s1633_s24 = scalar_lea.vmem %s2179_s18, 256  ;;  %p2333_p0 = scmp.ne.s32.totalorder %s2314_s22, 0 }
  0xd7   : > { %1296 = vmatpush3.bf16.msra.mxu1 %v1442_v2  ;;  %1288 = vmatpush3.bf16.msra.mxu0 %v1444_v5  ;;  %v1447_v2 = vld [vmem:[#allocation11] sm:$0xff]   ;;  %p1634_p10 = scmp.ne.s32.totalorder %s2179_s18, %s1633_s24  ;;  %s1757_s21 = smov [#allocation14]  }
  0xd8   : > { %1309 = vmatprep.subr.bf16.mxu1 %v1753_v0  ;;  %1301 = vmatprep.subr.bf16.mxu0 %v1753_v0  ;;  %s1637_s28 = sshll.u32 %s1757_s21, 4  ;;  %s1638_s28 = int_to_ptr.vmem [resolvable:$false] %s1637_s28 }
  0xd9   : > { %p1635_p4 = pnand %p1634_p10, %p2333_p0  ;;  %s1639_s23 = scalar_lea.vmem %s1638_s28, 512 }
  0xda   : > { %1298 = vmatmul.mubr.msk.bf16.vlgmr.msra.gmra.mrb[0].mxu1 %vm522_vm1, %v566_v7  ;;  %1290 = vmatmul.mubr.msk.bf16.vlgmr.msra.gmra.mrb[0].mxu0 %vm522_vm1, %v505_v8  ;;  %v1448_v8 = vld [vmem:[#allocation11 + $0x8] sm:$0xff]   ;;  %p1640_p13 = scmp.lt.s32.totalorder %s2179_s18, %s1638_s28  ;;  %p1641_p7 = scmp.lt.s32.totalorder %s1639_s23, %s1633_s24 }
  0xdb   : > { %1311 = vmatprep.mubr.msk.bf16.mxu1 %vm1754_vm0, %v1753_v0  ;;  %1305 = vmatprep.mubr.msk.bf16.mxu0 %vm1754_vm0, %v1753_v0  ;;  %s2177_s1 = scalar_lea.hbm %s2332_s27, %s1264_s10  ;;  %p1636_p9 = pneg %p1635_p4 }
  0xdc   : > { %1302 = vmatpush3.bf16.msra.mxu0 %v1445_v20  ;;  %p1642_p3 = por %p1641_p7, %p1640_p13 }
  0xdd   : > { %1303 = vmatprep.subr.bf16.mxu0 %v1753_v0 }
  0xde   : > { %p1643_p5 = pnand %p1642_p3, %p1636_p9 }
  0xe0   : > { %1304 = vmatpush3.bf16.msra.mxu0 %v1446_v21 }
  0xe1   : > { %1315 = vmatprep.subr.bf16.mxu0 %v1753_v0 }
  0xe3   : > { %1306 = vmatmul.mubr.msk.bf16.vlgmr.msra.gmra.mrb[4].mxu0 %vm522_vm1, %v626_v23 }
  0xe4   : > { %1317 = vmatprep.mubr.msk.bf16.mxu0 %vm1754_vm0, %v1753_v0 }
 0x1ad   : > { %v620_v9 = vpop.f32.mrb[0].mxu1  ;;  %v560_v13 = vpop.f32.mrb[0].mxu0 }
 0x1ae   : > { %v687_v10 = vpack.c.bf16 %v620_v9, %v620_v9  ;;  %v1299_v11 = vpop.f32.mrb[1].mxu1  ;;  %v686_v16 = vpack.c.bf16 %v560_v13, %v560_v13  ;;  %v1291_v17 = vpop.f32.mrb[1].mxu0 }
 0x1af   : > { %v623_v12 = vpop.f32.mrb[2].mxu1  ;;  %v563_v18 = vpop.f32.mrb[2].mxu0 }
 0x1b0   : > { %v694_v14 = vsel %vm689_vm2, %v687_v10, 0  ;;  %801 = vrot.lane.b32.xlu0 %v687_v10, %s1755_s19  ;;  %v1300_v15 = vpop.f32.mrb[3].mxu1  ;;  %v1292_v19 = vpop.f32.mrb[3].mxu0 }
 0x1b1   : > { %1310 = vmatpush3.bf16.xpose.msra.mxu1 %v694_v14 }
 0x1b2   : > { %1321 = vmatprep.subr.bf16.mxu1 %v1753_v0 }
 0x1b4   : > { %798 = vrot.lane.b32.xlu0 %v686_v16, %s1755_s19 }
 0x1b6   : > { %v680_v44 = vpop.f32.mrb[4].mxu0 }
 0x1b7   : > { %v1307_v45 = vpop.f32.mrb[5].mxu0  ;;  %v688_v48 = vpack.c.bf16 %v680_v44, %v680_v44 }
 0x1b8   : > { %1312 = vmatmul.mubr.msk.bf16.vlgmr.msra.gmra.mrb[4].mxu1 %vm689_vm2, %v686_v16  ;;  %v683_v46 = vpop.f32.mrb[6].mxu0 }
 0x1b9   : > { %1323 = vmatprep.mubr.msk.bf16.mxu1 %vm1754_vm0, %v1753_v0  ;;  %v1308_v47 = vpop.f32.mrb[7].mxu0  ;;  %v755_v49 = vsel %vm753_vm4, %v688_v48, 0 }
 0x1ba   : > { %1316 = vmatpush3.bf16.msra.mxu0 %v755_v49 }
 0x1bb   : > { %1327 = vmatprep.subr.bf16.mxu0 %v1753_v0 }
 0x222   : > { %v802_v24 = vpop.permute.xlu0 %801 }
 0x223   : > { %v807_v25 = vsel %vm689_vm2, %v802_v24, 0 }
 0x224   : > { %1322 = vmatpush3.bf16.xpose.msra.mxu1 %v807_v25 }
 0x225   : > { %1333 = vmatprep.subr.bf16.mxu1 %v1753_v0 }
 0x226   : > { %v799_v26 = vpop.permute.xlu0 %798 }
 0x22b   : > { %1324 = vmatmul.mubr.msk.bf16.vlgmr.msra.gmra.mrb[8].mxu1 %vm689_vm2, %v799_v26 }
 0x22c   : > { %1337 = vmatprep.mubr.msk.bf16.mxu1 %vm1754_vm0, %v1753_v0  ;;  %1334 = vmatpush3.bf16.msra.mxu1 %v1447_v2 }
 0x22d   : > { %1335 = vmatprep.subr.bf16.mxu1 %v1753_v0 }
 0x230   : > { %1336 = vmatpush3.bf16.msra.mxu1 %v1448_v8 }
 0x28b   : > { %v730_v27 = vpop.f32.mrb[4].mxu1 }
 0x28c   : > { %v736_v28 = vmul.f32 0.25, %v730_v27  ;;  %v1313_v29 = vpop.f32.mrb[5].mxu1 }
 0x28d   : > { %v733_v30 = vpop.f32.mrb[6].mxu1 }
 0x28e   : > { %v1314_v31 = vpop.f32.mrb[7].mxu1  ;;  %v738_v32 = vsel %vm737_vm3, %v736_v28, -inf }
 0x28f   : > { %739 = vmax.xlane.f32.xlu1 %v738_v32 }
 0x2fe   : > { %v843_v33 = vpop.f32.mrb[8].mxu1 }
 0x2ff   : > { %v849_v34 = vmul.f32 0.25, %v843_v33  ;;  %v1325_v35 = vpop.f32.mrb[9].mxu1 }
 0x300   : > { %v846_v36 = vpop.f32.mrb[10].mxu1 }
 0x301   : > { %v1326_v37 = vpop.f32.mrb[11].mxu1  ;;  %v850_v38 = vsel %vm737_vm3, %v849_v34, -inf }
 0x302   : > { %851 = vmax.xlane.f32.xlu1 %v850_v38 }
 0x31c   : > { %v740_v39 = vpop.xlane.xlu1 %739 }
 0x31d   : > { %v741_v40 = vsub.f32 %v736_v28, %v740_v39 }
 0x31f   : > { %v742_v41 = vmul.f32 1.442695, %v741_v40 }
 0x321   : > { %1449 = vpow2.f32 %v742_v41 }
 0x32b   : > { %v1450_v42 = vpop.eup %1449 }
 0x32c   : > { %v744_v43 = vsel %vm737_vm3, %v1450_v42, 0.0 }
 0x32d   : > { %745 = vadd.xlane.f32.xlu0 %v744_v43 }
 0x38f   : > { %v852_v50 = vpop.xlane.xlu1 %851 }
 0x390   : > { %v853_v51 = vsub.f32 %v849_v34, %v852_v50 }
 0x392   : > { %v854_v52 = vmul.f32 1.442695, %v853_v51 }
 0x394   : > { %1451 = vpow2.f32 %v854_v52 }
 0x39e   : > { %v1452_v53 = vpop.eup %1451 }
 0x39f   : > { %v856_v54 = vsel %vm737_vm3, %v1452_v53, 0.0 }
 0x3a0   : > { %857 = vadd.xlane.f32.xlu1 %v856_v54 }
 0x3b1   : > { %863 = vrot.lane.b32.xlu1 %v688_v48, %s1755_s19 }
 0x3ba   : > { %v746_v55 = vpop.xlane.xlu0 %745 }
 0x3bb   : > { %1453 = vrcp.f32 %v746_v55 }
 0x3c5   : > { %v1454_v56 = vpop.eup %1453 }
 0x3c6   : > { %v748_v57 = vmul.f32 %v1454_v56, %v1450_v42 }
 0x3c8   : > { %v749_v58 = vpack.c.bf16 %v748_v57, %v748_v57  ;;  %911 = vst.msk [vmem:[%s2155_s7] sm:$0xff] %vm737_vm3, %v748_v57 }
 0x3ca   : > { %1318 = vmatmul.mubr.msk.bf16.vlgmr.msra.gmra.mrb[8].mxu0 %vm737_vm3, %v749_v58 }
 0x3cb   : > { %1329 = vmatprep.mubr.msk.bf16.mxu0 %vm1754_vm0, %v1753_v0 }
 0x42d   : > { %v858_v59 = vpop.xlane.xlu1 %857 }
 0x42e   : > { %1455 = vrcp.f32 %v858_v59 }
 0x431   : > { %v864_v60 = vpop.permute.xlu1 %863 }
 0x432   : > { %v869_v61 = vsel %vm753_vm4, %v864_v60, 0 }
 0x433   : > { %1328 = vmatpush3.bf16.msra.mxu0 %v869_v61 }
 0x438   : > { %v1456_v62 = vpop.eup %1455 }
 0x439   : > { %v860_v63 = vmul.f32 %v1456_v62, %v1452_v53 }
 0x43b   : > { %v861_v1 = vpack.c.bf16 %v860_v63, %v860_v63  ;;  %912 = vst.msk [vmem:[%s2155_s7 + $0x8] sm:$0xff] %vm737_vm3, %v860_v63 }
 0x43d   : > { %1330 = vmatmul.mubr.msk.bf16.vlgmr.msra.gmra.mrb[12].mxu0 %vm737_vm3, %v861_v1 }
 0x49d   : > { %v791_v3 = vpop.f32.mrb[8].mxu0 }
 0x49e   : > { %v1319_v4 = vpop.f32.mrb[9].mxu0 }
 0x49f   : > { %v794_v5 = vpop.f32.mrb[10].mxu0 }
 0x4a0   : > { %v1320_v7 = vpop.f32.mrb[11].mxu0 }
 0x510   : > { %v905_v9 = vpop.f32.mrb[12].mxu0 }
 0x511   : > { %914 = vrot.lane.b32.xlu1 %v905_v9, %s1756_s16  ;;  %v1331_v10 = vpop.f32.mrb[13].mxu0 }
 0x512   : > { %v908_v11 = vpop.f32.mrb[14].mxu0 }
 0x513   : > { %v1332_v12 = vpop.f32.mrb[15].mxu0 }
 0x583   : > { %v915_v13 = vpop.permute.xlu1 %914 }
 0x584   : > { %v917_v14 = vsel %vm689_vm2, %v791_v3, %v915_v13 }
 0x585   : > { %v918_v15 = vpack.c.bf16 %v917_v14, %v917_v14 }
 0x587   : > { %1338 = vmatmul.mubr.msk.bf16.vlgmr.msra.gmra.mrb[12].mxu1 %vm522_vm1, %v918_v15 }
 0x65a   : > { %v972_v0 = vpop.f32.mrb[12].mxu1 }
 0x65b   : > { %v973_v16 = vadd.f32 %v972_v0, %v2109_v6  ;;  %v1339_v17 = vpop.f32.mrb[13].mxu1 }
 0x65c   : > { %v975_v18 = vpop.f32.mrb[14].mxu1 }
 0x65d   : > { %v1340_v19 = vpop.f32.mrb[15].mxu1  ;;  %v978_v20 = vsel %vm522_vm1, %v973_v16, 0.0 }
 0x65e   : > { %979 = vadd.xlane.f32.xlu1 %v978_v20 }
 0x6eb   : > { %v980_v21 = vpop.xlane.xlu1 %979 }
 0x6ec   : > { %v982_v22 = vmul.f32 0.03125, %v980_v21 }
 0x6ee   : > { %v983_v23 = vsub.f32 %v973_v16, %v982_v22 }
 0x6f0   : > { %v984_v24 = vmul.f32 %v983_v23, %v983_v23 }
 0x6f2   : > { %v985_v25 = vsel %vm522_vm1, %v984_v24, 0.0 }
 0x6f3   : > { %986 = vadd.xlane.f32.xlu0 %v985_v25 }
 0x6f4   : > { %1646 = shalt.err (!%p1643_p5)
}
 0x6f5   : > { %s1647_s9 = scalar_lea.hbm %s2177_s1, 256  ;;  %s1651_s26 = scalar_lea.hbm %s2332_s27, 512 }
 0x6f6   : > { %p1648_p2 = scmp.ne.s32.totalorder %s2177_s1, %s1647_s9  ;;  %p1652_p12 = scmp.lt.u32.totalorder %s2177_s1, %s2332_s27 }
 0x6f7   : > { %p1653_p1 = scmp.lt.u32.totalorder %s1651_s26, %s1647_s9  ;;  %p1655_p10 = scmp.lt.u32.totalorder %s1647_s9, %s2177_s1 }
 0x6f8   : > { %p1649_p8 = pnand %p1648_p2, %p2333_p0 }
 0x6f9   : > { %p1654_p6 = por %p1653_p1, %p1652_p12 }
 0x6fa   : > { %p1650_p11 = pneg %p1649_p8 }
 0x6fb   : > { %p1656_p4 = por %p1655_p10, %p1654_p6 }
 0x6fd   : > { %p1657_p9 = pnand %p1656_p4, %p1650_p11 }
 0x6ff   : > { %1660 = shalt.err (!%p1657_p9)
}
 0x700   : > { %s1758_s11 = smov 128   ;;  %s1759_s7 = smov 8  }
 0x701   : > { %1360 = dma.vmem_to_hbm [thread:$0]  (%p2333_p0), %s2179_s18, 256, %s2177_s1, %s1015_s3, %s1758_s11, %s1758_s11, %s1759_s7  }
 0x702   : > { %s2334_s13 = sld [smem:[#allocation29_spill]]  ;;  %s2335_s21 = sld [smem:[#allocation30_spill]] }
 0x703   : > { %s1259_s28 = sshll.u32 %s1837_s17, 7  ;;  %s493_s23 = scalar_lea.vmem [#allocation13], %s2079_s25 }
 0x704   : > { %s1028_s9 = sshll.u32 %s493_s23, 4  ;;  %s2336_s3 = sld [smem:[#allocation31_spill]]  ;;  %s2218_s9 = int_to_ptr.vmem [resolvable:$true] %s1028_s9 }
 0x705   : > { %s1010_s30 = scalar_lea.sflag [#allocation4], %s2076_s12  ;;  %s1661_s26 = scalar_lea.vmem %s2218_s9, 128 }
 0x706   : > { %p1662_p13 = scmp.ne.s32.totalorder %s2218_s9, %s1661_s26  ;;  %s1760_s17 = smov [#allocation13]  }
 0x707   : > { %s1665_s25 = sshll.u32 %s1760_s17, 4  ;;  %s1666_s25 = int_to_ptr.vmem [resolvable:$false] %s1665_s25 }
 0x708   : > { %v1255_v29 = vld [vmem:[%s2334_s13] ss:$0 sm:$0xff]  ;;  %p1663_p7 = pnand %p1662_p13, %p2333_p0  ;;  %s1667_s20 = scalar_lea.vmem %s1666_s25, 256 }
 0x709   : > { %v1256_v31 = vld [vmem:[%s2335_s21] ss:$0 sm:$0xff]  ;;  %p1668_p5 = scmp.lt.s32.totalorder %s2218_s9, %s1666_s25  ;;  %p1669_p2 = scmp.lt.s32.totalorder %s1667_s20, %s1661_s26 }
 0x70a   : > { %s2216_s19 = scalar_lea.hbm %s2336_s3, %s1259_s28  ;;  %p1664_p3 = pneg %p1663_p7 }
 0x70b   : > { %p1670_p8 = por %p1669_p2, %p1668_p5 }
 0x70d   : > { %p1671_p11 = pnand %p1670_p8, %p1664_p3 }
 0x780   : > { %v987_v6 = vpop.xlane.xlu0 %986 }
 0x781   : > { %v988_v26 = vmul.f32 0.03125, %v987_v6 }
 0x783   : > { %v989_v27 = vadd.f32 1e-05, %v988_v26 }
 0x785   : > { %1457 = vrsqrt.f32 %v989_v27 }
 0x78f   : > { %v1458_v28 = vpop.eup %1457 }
 0x790   : > { %v991_v30 = vmul.f32 %v1458_v28, %v983_v23 }
 0x792   : > { %v999_v32 = vmul.f32 %v1255_v29, %v991_v30 }
 0x794   : > { %v1007_v33 = vadd.f32 %v1256_v31, %v999_v32 }
 0x796   : > { %1008 = vst.msk [vmem:[%s493_s23] sm:$0xff] %vm522_vm1, %v1007_v33 }
 0x797   : > { %1674 = shalt.err (!%p1671_p11)
}
 0x798   : > { %s1675_s12 = scalar_lea.hbm %s2216_s19, 128  ;;  %s1679_s7 = scalar_lea.hbm %s2336_s3, 256 }
 0x799   : > { %p1676_p12 = scmp.ne.s32.totalorder %s2216_s19, %s1675_s12  ;;  %p1680_p10 = scmp.lt.u32.totalorder %s2216_s19, %s2336_s3 }
 0x79a   : > { %p1681_p4 = scmp.lt.u32.totalorder %s1679_s7, %s1675_s12  ;;  %p1683_p13 = scmp.lt.u32.totalorder %s1675_s12, %s2216_s19 }
 0x79b   : > { %p1677_p1 = pnand %p1676_p12, %p2333_p0 }
 0x79c   : > { %p1682_p9 = por %p1681_p4, %p1680_p10 }
 0x79d   : > { %p1678_p6 = pneg %p1677_p1 }
 0x79e   : > { %p1684_p7 = por %p1683_p13, %p1682_p9 }
 0x7a0   : > { %p1685_p3 = pnand %p1684_p7, %p1678_p6 }
 0x7a2   : > { %1688 = shalt.err (!%p1685_p3)
}
 0x7a3   : > { %1359 = dma.vmem_to_hbm [thread:$0]  (%p2333_p0), %s2218_s9, 128, %s2216_s19, %s1010_s30  }
 0x7a4 PF: > { %s2337_s13 = sld [smem:[#allocation22_spill]]  ;;  %s2338_s29 = sld [smem:[#allocation24_spill]] }
 0x7a5   : > { %s2339_s24 = sld [smem:[#allocation23_spill]] }
 0x7aa   : > { %s1056_s21 = sand.u32 1, %s2337_s13   ;;  %p2340_p5 = scmp.ne.s32.totalorder %s2338_s29, 0 }
 0x7ab   : > { %p2341_p2 = scmp.ge.s32.totalorder %s2339_s24, 2  ;;  %s1057_s28 = scalar_lea.sflag [#allocation4], %s1056_s21 }
 0x7ad   : > { %p1384_p8 = pnand %p2341_p2, %p2340_p5 }
 0x7af   : > { %1722 = dma.done.wait (!%p1384_p8), %s1057_s28, 128  }
 0x7b0   : > { %1724 = vsyncadd (!%p1384_p8), %s1057_s28, 4294967168  ;;  %s1066_s23 = scalar_lea.sflag [#allocation15], %s1056_s21 }
 0x7b1   : > { %1726 = dma.done.wait (!%p1384_p8), %s1066_s23, 256  }
 0x7b2   : > { %1728 = vsyncadd (!%p1384_p8), %s1066_s23, 4294967040  ;;  %s2342_s16 = sld [smem:[#allocation25_spill]]  ;;  %s2343_s22 = sld [smem:[#allocation26_spill]] }
 0x7b3   : > { %s2344_s13 = smov %s1735_s14  ;;  %s2345_s14 = smov %s1739_s15 }
 0x7b8   : > { %p32_p0 = scmp.ge.s32.totalorder %s2342_s16, 4   ;;  %s2346_s15 = smov %s2343_s22 }
 0x7ba   :  { %34 = sbr.rel (!%p32_p0) target bundleno = 18 (0x12), region = 154 }
 0x7c1   :  { %1071 = vsyncpa [#allocation3], 1 }
 0x7c2   :  { %1073 = vsyncpa [#allocation3 + $0x1], 1 }
 0x7c3   :  { %1074 = vsyncpa [#allocation6], 1 }
 0x7c4   :  { %1076 = vsyncpa [#allocation6 + $0x1], 1 }
 0x7c5   :  { %1077 = vsyncpa [#allocation9], 1 }
 0x7c6   :  { %1078 = vsyncpa [#allocation12], 1 }
 0x7c7   :  { %1079 = vsyncpa [#allocation4], 1 }
 0x7c8   :  { %1081 = vsyncpa [#allocation4 + $0x1], 1 }
 0x7c9   :  { %1082 = vsyncpa [#allocation15], 1 }
 0x7ca   :  { %1084 = vsyncpa [#allocation15 + $0x1], 1 }

</bundles_post_ra>
